<compile_context>
chip_gen: v6e
topology: v6e:2x2x1
jax: 0.10.0
libtpu: 0.0.40
codegen_flags: <defaults>
</compile_context>

<pallas_src>
import functools

import numpy as np
import jax
import jax.numpy as jnp
from jax import lax
from jax.experimental import pallas as pl
from jax.experimental.pallas import tpu as pltpu


# ---------------------------------------------------------------------------
# Roll-direction probe (one-time): guards the sign convention of pltpu.roll.
# ---------------------------------------------------------------------------
@functools.lru_cache(maxsize=1)
def _roll_matches_numpy():
    def probe(x_ref, o_ref):
        o_ref[...] = pltpu.roll(x_ref[...], 1, axis=1)

    x = jnp.broadcast_to(jnp.arange(128, dtype=jnp.float32), (8, 128))
    r = pl.pallas_call(
        probe, out_shape=jax.ShapeDtypeStruct((8, 128), jnp.float32))(x)
    # np.roll semantics: result[0] == x[-1] == 127.
    return bool(jax.device_get(r[0, 0]) == 127.0)


# ---------------------------------------------------------------------------
# In-kernel helpers
# ---------------------------------------------------------------------------
def _instance_norm(v, eps=1e-5):
    """Per-channel (row) norm over the lane axis; single pass, biased variance."""
    mean = jnp.mean(v, axis=1, keepdims=True)
    m2 = jnp.mean(v * v, axis=1, keepdims=True)
    var = jnp.maximum(m2 - mean * mean, 0.0)
    return (v - mean) * lax.rsqrt(var + eps)


# ---------------------------------------------------------------------------
# Fused ResidualUnit kernel (one batch element per grid step)
# ---------------------------------------------------------------------------
def _residual_unit_kernel(x_ref, mask1_ref, mask2_ref, w1r_ref, b1r_ref,
                          w2_ref, b2_ref, prelu_ref, out_ref,
                          col1_ref, col2_ref, *, shifts, cin, cout):
    x = x_ref[0]                                           # (Cin, S) f32

    # ---- in-VMEM im2col for conv1 + residual: 27 lane rolls into scratch ----
    for t, sh in enumerate(shifts):
        v = x if sh == 0 else pltpu.roll(x, sh, axis=1)
        col1_ref[t * cin:(t + 1) * cin, :] = v
    # One whole-array mask multiply (pre-broadcast mask), then bf16 for the MXU.
    a1 = (col1_ref[...] * mask1_ref[...]).astype(jnp.bfloat16)    # (27*Cin, S)

    # ---- conv1 and the residual conv as ONE matmul (stacked weights) --------
    y = jnp.dot(w1r_ref[...], a1, preferred_element_type=jnp.float32)
    y = y + b1r_ref[...]                                   # (2*Cout, S)
    h = y[:cout, :]                                        # conv1 pre-norm
    res = y[cout:, :]                                      # residual branch

    h = _instance_norm(h)                                  # Dropout(p=0) = id
    h = jnp.where(h >= 0, h, prelu_ref[0] * h)             # PReLU

    # ---- in-VMEM im2col for conv2 --------------------------------------------
    for t, sh in enumerate(shifts):
        v = h if sh == 0 else pltpu.roll(h, sh, axis=1)
        col2_ref[t * cout:(t + 1) * cout, :] = v
    a2 = (col2_ref[...] * mask2_ref[...]).astype(jnp.bfloat16)    # (27*Cout, S)

    g = jnp.dot(w2_ref[...], a2, preferred_element_type=jnp.float32)
    g = g + b2_ref[...]                                    # (Cout, S)
    g = _instance_norm(g)
    g = jnp.where(g >= 0, g, prelu_ref[1] * g)

    out_ref[0] = g + res


# ---------------------------------------------------------------------------
# Wrapper
# ---------------------------------------------------------------------------
def residual_unit_pallas(x, w1, b1, w2, b2, wr, br, a1, a2, *, stride=1):
    assert stride == 1, "TODO(synk): fused flat-shift path only supports stride=1"
    N, Cin, D, H, W = x.shape
    Cout = w1.shape[0]
    S = D * H * W
    K = 3
    n_taps = K ** 3

    roll_like_np = _roll_matches_numpy()

    # Static tap shifts + boundary/wrap validity mask (data independent).
    dd, hh, ww = np.meshgrid(np.arange(D), np.arange(H), np.arange(W),
                             indexing="ij")
    shifts, masks = [], []
    for kd in range(K):
        for kh in range(K):
            for kw in range(K):
                off = (kd - 1) * H * W + (kh - 1) * W + (kw - 1)
                # Want result[:, p] = x[:, (p + off) % S].
                sh = (-off) % S if roll_like_np else off % S
                shifts.append(int(sh))
                valid = ((dd + kd - 1 >= 0) & (dd + kd - 1 < D) &
                         (hh + kh - 1 >= 0) & (hh + kh - 1 < H) &
                         (ww + kw - 1 >= 0) & (ww + kw - 1 < W))
                masks.append(valid.reshape(-1))
    mask = np.stack(masks).astype(np.float32)                      # (27, S)
    # Pre-broadcast to the stacked-operand row layout (row = t*C + c).
    mask1 = jnp.asarray(np.repeat(mask, Cin, axis=0))               # (27*Cin, S)
    mask2 = jnp.asarray(np.repeat(mask, Cout, axis=0))              # (27*Cout, S)

    # Repack weights for single-matmul form (contraction row = t*C + c).
    # PyTorch Conv3d weight layout: (O, I, kd, kh, kw).
    w1_km = jnp.transpose(w1, (2, 3, 4, 1, 0)).reshape(n_taps * Cin, Cout)
    wr_km = jnp.transpose(wr, (2, 3, 4, 1, 0)).reshape(n_taps * Cin, Cout)
    w1r = jnp.concatenate([w1_km, wr_km], axis=1).T.astype(jnp.bfloat16)
    w2r = (jnp.transpose(w2, (2, 3, 4, 1, 0))
           .reshape(n_taps * Cout, Cout).T.astype(jnp.bfloat16))
    b1r = jnp.concatenate([b1, br]).reshape(2 * Cout, 1).astype(jnp.float32)
    b2r = b2.reshape(Cout, 1).astype(jnp.float32)
    prelu = jnp.asarray([a1, a2], dtype=jnp.float32)                 # (2,)

    x3 = x.reshape(N, Cin, S).astype(jnp.float32)

    kernel = functools.partial(_residual_unit_kernel, shifts=tuple(shifts),
                               cin=Cin, cout=Cout)

    out3 = pl.pallas_call(
        kernel,
        out_shape=jax.ShapeDtypeStruct((N, Cout, S), jnp.float32),
        grid=(N,),
        in_specs=[
            pl.BlockSpec((1, Cin, S), lambda n: (n, 0, 0)),               # x
            pl.BlockSpec((n_taps * Cin, S), lambda n: (0, 0)),            # mask1
            pl.BlockSpec((n_taps * Cout, S), lambda n: (0, 0)),           # mask2
            pl.BlockSpec((2 * Cout, n_taps * Cin), lambda n: (0, 0)),     # [w1;wr]
            pl.BlockSpec((2 * Cout, 1), lambda n: (0, 0)),                # [b1;br]
            pl.BlockSpec((Cout, n_taps * Cout), lambda n: (0, 0)),        # w2
            pl.BlockSpec((Cout, 1), lambda n: (0, 0)),                    # b2
            pl.BlockSpec(memory_space=pltpu.MemorySpace.SMEM),            # slopes
        ],
        out_specs=pl.BlockSpec((1, Cout, S), lambda n: (n, 0, 0)),
        scratch_shapes=[
            pltpu.VMEM((n_taps * Cin, S), jnp.float32),    # im2col operand conv1/res
            pltpu.VMEM((n_taps * Cout, S), jnp.float32),   # im2col operand conv2
        ],
        compiler_params=pltpu.CompilerParams(
            dimension_semantics=("parallel",)),
    )(x3, mask1, mask2, w1r, b1r, w2r, b2r, prelu)
    return out3.reshape(N, Cout, D, H, W)


# ---------------------------------------------------------------------------
# Pure-JAX reference (mirrors the PyTorch forward exactly, full f32 precision)
# ---------------------------------------------------------------------------
def residual_unit_ref(x, w1, b1, w2, b2, wr, br, a1, a2, *, stride=1):
    def conv3(v, w, b, s):
        y = lax.conv_general_dilated(
            v, w, window_strides=(s,) * 3, padding=[(1, 1)] * 3,
            dimension_numbers=("NCDHW", "OIDHW", "NCDHW"),
            precision=lax.Precision.HIGHEST)
        return y + b[None, :, None, None, None]

    def inorm(v, eps=1e-5):
        m = v.mean(axis=(2, 3, 4), keepdims=True)
        var = jnp.square(v - m).mean(axis=(2, 3, 4), keepdims=True)
        return (v - m) / jnp.sqrt(var + eps)

    def prelu(v, a):
        return jnp.where(v >= 0, v, a * v)

    h = prelu(inorm(conv3(x, w1, b1, stride)), a1)
    g = prelu(inorm(conv3(h, w2, b2, 1)), a2)
    return g + conv3(x, wr, br, stride)


if __name__ == "__main__":
    N, Cin, Cout = 2, 4, 8
    D = H = W = 8
    stride = 1

    key = jax.random.PRNGKey(0)
    kx, k1, k2, k3, k4, k5, k6 = jax.random.split(key, 7)

    x = jax.random.normal(kx, (N, Cin, D, H, W), jnp.float32)

    # Deterministic synthetic parameters (shapes match the nn.Module __init__).
    w1 = 0.15 * jax.random.normal(k1, (Cout, Cin, 3, 3, 3), jnp.float32)
    b1 = 0.10 * jax.random.normal(k2, (Cout,), jnp.float32)
    w2 = 0.15 * jax.random.normal(k3, (Cout, Cout, 3, 3, 3), jnp.float32)
    b2 = 0.10 * jax.random.normal(k4, (Cout,), jnp.float32)
    wr = 0.15 * jax.random.normal(k5, (Cout, Cin, 3, 3, 3), jnp.float32)
    br = 0.10 * jax.random.normal(k6, (Cout,), jnp.float32)
    a1 = 0.25   # nn.PReLU() default init
    a2 = 0.25

    out = residual_unit_pallas(x, w1, b1, w2, b2, wr, br, a1, a2, stride=stride)
    out = jax.block_until_ready(out)

    ref = residual_unit_ref(x, w1, b1, w2, b2, wr, br, a1, a2, stride=stride)
    assert out.shape == (N, Cout, D, H, W)
    max_err = float(jnp.max(jnp.abs(out - ref)))
    # Kernel matmuls use bf16 operands with f32 accumulation (per perf review);
    # tolerance is sized for single-pass bf16 vs the full-f32 reference.
    assert jnp.allclose(out, ref, rtol=5e-2, atol=5e-2), max_err

    print("KERNEL_OK")
</pallas_src>

<mosaic_0001>
module attributes {stable_mosaic.version = 11 : i64} {
  func.func @probe(%arg0: memref<8x128xf32, #tpu.memory_space<vmem>>, %arg1: memref<8x128xf32, #tpu.memory_space<vmem>>) attributes {dimension_semantics = [], scalar_prefetch = 0 : i64, scratch_operands = 0 : i64, tpu.core_type = #tpu.core_type<tc>} {
    %c0 = arith.constant 0 : index
    %c0_0 = arith.constant 0 : index
    %0 = vector.load %arg0[%c0, %c0_0] : memref<8x128xf32, #tpu.memory_space<vmem>>, vector<8x128xf32>
    %c1_i32 = arith.constant 1 : i32
    %1 = tpu.dynamic_rotate %0 by %c1_i32 dim 1 : vector<8x128xf32>, i32 -> vector<8x128xf32>
    %c0_1 = arith.constant 0 : index
    %c0_2 = arith.constant 0 : index
    %2 = vector.load %arg1[%c0_1, %c0_2] : memref<8x128xf32, #tpu.memory_space<vmem>>, vector<8x128xf32>
    tpu.vector_store %arg1[%c0_1, %c0_2], %1 {strides = array<i32>} : memref<8x128xf32, #tpu.memory_space<vmem>>, vector<8x128xf32>,
    return
  }
}

</mosaic_0001>

<bundles_post_ra>
// kernel: tpu_custom_call.1
= control target key start
LH: loop header
LB: loop body
LE: loop exit
PB: predicated region body
PF: predicated region fallthrough
CT: control target
= control target key end

     0   :  { %6 = vsyncpa [#allocation3], 0  ;;  %s106_s0 = inlined_call_operand.hbm [shape: f32[8,128], index: 0, kind: input, shape index: {}]   ;;  %s107_s1 = inlined_call_operand.hbm [shape: f32[8,128], index: 1, kind: output, shape index: {}]  }
   0x1   :  { %7 = vsyncpa [#allocation4], 0  ;;  %s87_s6 = smov [#allocation2]  }
   0x2   :  { %s14_s7 = sshll.u32 %s87_s6, 4  ;;  %s15_s7 = int_to_ptr.vmem [resolvable:$true] %s14_s7 }
   0x3   :  { %s51_s8 = scalar_lea.vmem %s15_s7, 128  ;;  %p56_p1 = scmp.lt.s32.totalorder %s15_s7, %s15_s7 }
   0x4   :  { %p52_p0 = scmp.ne.s32.totalorder %s15_s7, %s51_s8  ;;  %p57_p2 = scmp.lt.s32.totalorder %s51_s8, %s51_s8 }
   0x6   :  { %p58_p3 = por %p57_p2, %p56_p1 }
   0x8   :  { %p59_p4 = pnand %p58_p3, %p52_p0 }
   0xa   :  { %62 = shalt.err (!%p59_p4)
}
   0xb   :  { %17 = dma.hbm_to_vmem [thread:$0]  %s106_s0, 128, %s15_s7, [#allocation3]  }
   0xc   :  { %83 = dma.done.wait [#allocation3], 128  }
   0xd   :  { %84 = vsyncadd [#allocation3], 4294967168  ;;  %v21_v0 = vld [vmem:[#allocation2] sm:$0xff]  ;;  %s88_s11 = smov 1   ;;  %s89_s12 = smov [#allocation5]  }
   0xe   :  { %22 = vrot.lane.b32.xlu0 %v21_v0, %s88_s11  ;;  %s31_s13 = sshll.u32 %s89_s12, 4  ;;  %s32_s13 = int_to_ptr.vmem [resolvable:$true] %s31_s13 }
   0xf   :  { %s63_s14 = scalar_lea.vmem %s32_s13, 128  ;;  %p68_p6 = scmp.lt.s32.totalorder %s32_s13, %s32_s13 }
  0x10   :  { %p64_p5 = scmp.ne.s32.totalorder %s32_s13, %s63_s14  ;;  %p69_p7 = scmp.lt.s32.totalorder %s63_s14, %s63_s14 }
  0x12   :  { %p70_p8 = por %p69_p7, %p68_p6 }
  0x14   :  { %p71_p9 = pnand %p70_p8, %p64_p5 }
  0x80   :  { %v23_v1 = vpop.permute.xlu0 %22 }
  0x81   :  { %24 = vst [vmem:[#allocation5] sm:$0xff] %v23_v1 }
  0x82   :  { %74 = shalt.err (!%p71_p9)
}
  0x83   :  { %34 = dma.vmem_to_hbm [thread:$0]  %s32_s13, 128, %s107_s1, [#allocation4]  }
  0x84   :  { %85 = dma.done.wait [#allocation4], 128  }
  0x85   :  { %86 = vsyncadd [#allocation4], 4294967168 }
  0x86   :  { %38 = vsyncpa [#allocation3], 1 }
  0x87   :  { %39 = vsyncpa [#allocation4], 1 }

</bundles_post_ra>
